<compile_context>
chip_gen: v5e
topology: v5e:2x2
jax: 0.10.0
libtpu: 0.0.40
codegen_flags: <defaults>
</compile_context>

<pallas_src>
import jax
import jax.numpy as jnp
from jax.experimental import pallas as pl
from jax.experimental.pallas import tpu as pltpu


def _round_up(x, m):
    return ((x + m - 1) // m) * m


def _mlp_kernel(t_ref,
                w1_ref, b1_ref,
                w2_ref, b2_ref,
                w3_ref, b3_ref,
                w4_ref, b4_ref,
                out_ref):
    """One batch tile of the 4-layer MLP, feature-on-sublane, all in VMEM."""
    t = t_ref[...]                                                   # (1, TB)

    # Layer 1: in_features == 1 -> pure VPU broadcast (no MXU).
    # (64,1) * (1,TB) + (64,1) -> (64,TB)
    h1 = jnp.tanh(w1_ref[...] * t + b1_ref[...])

    # Layer 2: (128,64) @ (64,TB) -> (128,TB)   MXU, f32 accumulate.
    h2 = jnp.tanh(jnp.dot(w2_ref[...], h1,
                          preferred_element_type=jnp.float32) + b2_ref[...])

    # Layer 3: (64,128) @ (128,TB) -> (64,TB)
    h3 = jnp.tanh(jnp.dot(w3_ref[...], h2,
                          preferred_element_type=jnp.float32) + b3_ref[...])

    # Layer 4: (2,64) @ (64,TB) -> (2,TB)   lane-dense output, no padding.
    y = jnp.dot(w4_ref[...], h3,
                preferred_element_type=jnp.float32) + b4_ref[...]

    out_ref[...] = y.astype(out_ref.dtype)


def traditional_nn_forward(t, params, tile_batch=4096):
    """t: (batch, 1) f32.  params: PyTorch-layout weights w1..w4 (out,in),
    biases b1..b4 (out,1).  Returns (batch, 2) f32."""
    batch = t.shape[0]

    # Batch tile: multiple of 128 (lane-dense), capped at tile_batch.
    tile_batch = max(128, _round_up(tile_batch, 128))
    tb = min(tile_batch, _round_up(batch, 128))
    padded_batch = _round_up(batch, tb)

    # Batch-last input: (batch,1) -> (1,batch) is a free reshape, then pad.
    t_row = jnp.reshape(t, (1, batch))
    if padded_batch != batch:
        t_row = jnp.pad(t_row, ((0, 0), (0, padded_batch - batch)))

    grid = (padded_batch // tb,)

    # Weights/biases: full-array blocks pinned at (0, 0) -> VMEM-resident.
    def _resident(shape):
        return pl.BlockSpec(shape, lambda i: (0, 0))

    in_specs = [
        pl.BlockSpec((1, tb), lambda i: (0, i)),          # t  (1, padded_batch)
        _resident(params["w1"].shape),                    # (64, 1)
        _resident(params["b1"].shape),                    # (64, 1)
        _resident(params["w2"].shape),                    # (128, 64)
        _resident(params["b2"].shape),                    # (128, 1)
        _resident(params["w3"].shape),                    # (64, 128)
        _resident(params["b3"].shape),                    # (64, 1)
        _resident(params["w4"].shape),                    # (2, 64)
        _resident(params["b4"].shape),                    # (2, 1)
    ]
    out_spec = pl.BlockSpec((2, tb), lambda i: (0, i))

    # 2 * (1*64 + 64*128 + 128*64 + 64*2) flops/row, 256 tanh/row.
    flops_per_row = 2 * (64 + 64 * 128 + 128 * 64 + 64 * 2)
    weight_bytes = 4 * (64 + 64 + 128 * 64 + 128 + 64 * 128 + 64 + 2 * 64 + 2)
    cost = pl.CostEstimate(
        flops=flops_per_row * padded_batch,
        transcendentals=256 * padded_batch,
        bytes_accessed=4 * (1 + 2) * padded_batch + weight_bytes,
    )

    out = pl.pallas_call(
        _mlp_kernel,
        out_shape=jax.ShapeDtypeStruct((2, padded_batch), jnp.float32),
        grid=grid,
        in_specs=in_specs,
        out_specs=out_spec,
        compiler_params=pltpu.CompilerParams(
            dimension_semantics=("parallel",)),
        cost_estimate=cost,
    )(t_row,
      params["w1"], params["b1"],
      params["w2"], params["b2"],
      params["w3"], params["b3"],
      params["w4"], params["b4"])

    # (2, padded_batch) -> (batch, 2): only 8 B/row touched.
    return out[:, :batch].T


def init_params(key):
    """nn.Linear-style init; weights in PyTorch (out,in) layout, biases (out,1)."""
    dims = [(1, 64), (64, 128), (128, 64), (64, 2)]
    params = {}
    keys = jax.random.split(key, 2 * len(dims))
    for i, (fan_in, fan_out) in enumerate(dims):
        bound = 1.0 / jnp.sqrt(jnp.float32(fan_in))
        w = jax.random.uniform(keys[2 * i], (fan_out, fan_in),
                               minval=-bound, maxval=bound, dtype=jnp.float32)
        b = jax.random.uniform(keys[2 * i + 1], (fan_out, 1),
                               minval=-bound, maxval=bound, dtype=jnp.float32)
        params[f"w{i + 1}"] = w
        params[f"b{i + 1}"] = b
    return params


def reference_forward(t, params):
    """Pure-JAX reference in standard (batch, feature) layout: y = x @ W.T + b."""
    h = t
    h = jnp.tanh(h @ params["w1"].T + params["b1"].T)
    h = jnp.tanh(h @ params["w2"].T + params["b2"].T)
    h = jnp.tanh(h @ params["w3"].T + params["b3"].T)
    return h @ params["w4"].T + params["b4"].T


if __name__ == "__main__":
    key = jax.random.PRNGKey(0)
    k_params, k_input = jax.random.split(key)

    params = init_params(k_params)
    batch = 8
    t = jax.random.uniform(k_input, (batch, 1), dtype=jnp.float32)  # time inputs

    y = traditional_nn_forward(t, params)
    jax.block_until_ready(y)

    y_ref = reference_forward(t, params)
    assert y.shape == (batch, 2)
    assert jnp.allclose(y, y_ref, atol=1e-5, rtol=1e-5)

    # Non-tile-aligned, multi-tile batch to exercise the grid / padding path.
    k2 = jax.random.PRNGKey(1)
    t2 = jax.random.uniform(k2, (300, 1), dtype=jnp.float32)
    y2 = traditional_nn_forward(t2, params, tile_batch=128)  # grid of 3 steps
    jax.block_until_ready(y2)
    assert y2.shape == (300, 2)
    assert jnp.allclose(y2, reference_forward(t2, params), atol=1e-5, rtol=1e-5)

    print("KERNEL_OK")
</pallas_src>

<mosaic_0001>
module attributes {stable_mosaic.version = 11 : i64} {
  func.func @_mlp_kernel(%arg0: i32, %arg1: memref<1x128xf32, #tpu.memory_space<vmem>>, %arg2: memref<64x1xf32, #tpu.memory_space<vmem>>, %arg3: memref<64x1xf32, #tpu.memory_space<vmem>>, %arg4: memref<128x64xf32, #tpu.memory_space<vmem>>, %arg5: memref<128x1xf32, #tpu.memory_space<vmem>>, %arg6: memref<64x128xf32, #tpu.memory_space<vmem>>, %arg7: memref<64x1xf32, #tpu.memory_space<vmem>>, %arg8: memref<2x64xf32, #tpu.memory_space<vmem>>, %arg9: memref<2x1xf32, #tpu.memory_space<vmem>>, %arg10: memref<2x128xf32, #tpu.memory_space<vmem>>) attributes {dimension_semantics = [#tpu.dimension_semantics<parallel>], iteration_bounds = array<i64: 1>, scalar_prefetch = 0 : i64, scratch_operands = 0 : i64, tpu.core_type = #tpu.core_type<tc>, window_params = [{transform_indices = @transform_0, window_bounds = array<i64: 1, 128>}, {pipeline_mode = #tpu.pipeline_mode<synchronous>, transform_indices = @transform_1, window_bounds = array<i64: 64, 1>}, {pipeline_mode = #tpu.pipeline_mode<synchronous>, transform_indices = @transform_2, window_bounds = array<i64: 64, 1>}, {pipeline_mode = #tpu.pipeline_mode<synchronous>, transform_indices = @transform_3, window_bounds = array<i64: 128, 64>}, {pipeline_mode = #tpu.pipeline_mode<synchronous>, transform_indices = @transform_4, window_bounds = array<i64: 128, 1>}, {pipeline_mode = #tpu.pipeline_mode<synchronous>, transform_indices = @transform_5, window_bounds = array<i64: 64, 128>}, {pipeline_mode = #tpu.pipeline_mode<synchronous>, transform_indices = @transform_6, window_bounds = array<i64: 64, 1>}, {pipeline_mode = #tpu.pipeline_mode<synchronous>, transform_indices = @transform_7, window_bounds = array<i64: 2, 64>}, {pipeline_mode = #tpu.pipeline_mode<synchronous>, transform_indices = @transform_8, window_bounds = array<i64: 2, 1>}, {transform_indices = @transform_9, window_bounds = array<i64: 2, 128>}]} {
    %c0 = arith.constant 0 : index
    %c0_0 = arith.constant 0 : index
    %0 = vector.load %arg1[%c0, %c0_0] : memref<1x128xf32, #tpu.memory_space<vmem>>, vector<1x128xf32>
    %c0_1 = arith.constant 0 : index
    %c0_2 = arith.constant 0 : index
    %1 = vector.load %arg2[%c0_1, %c0_2] : memref<64x1xf32, #tpu.memory_space<vmem>>, vector<64x1xf32>
    %2 = vector.broadcast %1 : vector<64x1xf32> to vector<64x128xf32>
    %3 = vector.broadcast %0 : vector<1x128xf32> to vector<64x128xf32>
    %4 = arith.mulf %2, %3 : vector<64x128xf32>
    %c0_3 = arith.constant 0 : index
    %c0_4 = arith.constant 0 : index
    %5 = vector.load %arg3[%c0_3, %c0_4] : memref<64x1xf32, #tpu.memory_space<vmem>>, vector<64x1xf32>
    %6 = vector.broadcast %5 : vector<64x1xf32> to vector<64x128xf32>
    %7 = arith.addf %4, %6 : vector<64x128xf32>
    %8 = math.tanh %7 : vector<64x128xf32>
    %c0_5 = arith.constant 0 : index
    %c0_6 = arith.constant 0 : index
    %9 = vector.load %arg4[%c0_5, %c0_6] : memref<128x64xf32, #tpu.memory_space<vmem>>, vector<128x64xf32>
    %cst = arith.constant dense<0.000000e+00> : vector<128x128xf32>
    %10 = tpu.matmul %9, %8, %cst {dimension_numbers = #tpu.dot_dimension_numbers<[1], [0], [0], [1], [0, 0, 1, 1], [], []>} : vector<128x64xf32>, vector<64x128xf32>, vector<128x128xf32> -> vector<128x128xf32>
    %c0_7 = arith.constant 0 : index
    %c0_8 = arith.constant 0 : index
    %11 = vector.load %arg5[%c0_7, %c0_8] : memref<128x1xf32, #tpu.memory_space<vmem>>, vector<128x1xf32>
    %12 = vector.broadcast %11 : vector<128x1xf32> to vector<128x128xf32>
    %13 = arith.addf %10, %12 : vector<128x128xf32>
    %14 = math.tanh %13 : vector<128x128xf32>
    %c0_9 = arith.constant 0 : index
    %c0_10 = arith.constant 0 : index
    %15 = vector.load %arg6[%c0_9, %c0_10] : memref<64x128xf32, #tpu.memory_space<vmem>>, vector<64x128xf32>
    %cst_11 = arith.constant dense<0.000000e+00> : vector<64x128xf32>
    %16 = tpu.matmul %15, %14, %cst_11 {dimension_numbers = #tpu.dot_dimension_numbers<[1], [0], [0], [1], [0, 0, 1, 1], [], []>} : vector<64x128xf32>, vector<128x128xf32>, vector<64x128xf32> -> vector<64x128xf32>
    %c0_12 = arith.constant 0 : index
    %c0_13 = arith.constant 0 : index
    %17 = vector.load %arg7[%c0_12, %c0_13] : memref<64x1xf32, #tpu.memory_space<vmem>>, vector<64x1xf32>
    %18 = vector.broadcast %17 : vector<64x1xf32> to vector<64x128xf32>
    %19 = arith.addf %16, %18 : vector<64x128xf32>
    %20 = math.tanh %19 : vector<64x128xf32>
    %c0_14 = arith.constant 0 : index
    %c0_15 = arith.constant 0 : index
    %21 = vector.load %arg8[%c0_14, %c0_15] : memref<2x64xf32, #tpu.memory_space<vmem>>, vector<2x64xf32>
    %cst_16 = arith.constant dense<0.000000e+00> : vector<2x128xf32>
    %22 = tpu.matmul %21, %20, %cst_16 {dimension_numbers = #tpu.dot_dimension_numbers<[1], [0], [0], [1], [0, 0, 1, 1], [], []>} : vector<2x64xf32>, vector<64x128xf32>, vector<2x128xf32> -> vector<2x128xf32>
    %c0_17 = arith.constant 0 : index
    %c0_18 = arith.constant 0 : index
    %23 = vector.load %arg9[%c0_17, %c0_18] : memref<2x1xf32, #tpu.memory_space<vmem>>, vector<2x1xf32>
    %24 = vector.broadcast %23 : vector<2x1xf32> to vector<2x128xf32>
    %25 = arith.addf %22, %24 : vector<2x128xf32>
    %c0_19 = arith.constant 0 : index
    %c0_20 = arith.constant 0 : index
    %26 = vector.load %arg10[%c0_19, %c0_20] : memref<2x128xf32, #tpu.memory_space<vmem>>, vector<2x128xf32>
    tpu.vector_store %arg10[%c0_19, %c0_20], %25 {strides = array<i32>} : memref<2x128xf32, #tpu.memory_space<vmem>>, vector<2x128xf32>,
    return
  }
  func.func @transform_0(%arg0: i32) -> (i32, i32) {
    %c0_i32 = arith.constant 0 : i32
    %c0_i32_0 = arith.constant 0 : i32
    return %c0_i32, %arg0 : i32, i32
  }
  func.func @transform_1(%arg0: i32) -> (i32, i32) {
    %c0_i32 = arith.constant 0 : i32
    %c0_i32_0 = arith.constant 0 : i32
    %c0_i32_1 = arith.constant 0 : i32
    return %c0_i32, %c0_i32_0 : i32, i32
  }
  func.func @transform_2(%arg0: i32) -> (i32, i32) {
    %c0_i32 = arith.constant 0 : i32
    %c0_i32_0 = arith.constant 0 : i32
    %c0_i32_1 = arith.constant 0 : i32
    return %c0_i32, %c0_i32_0 : i32, i32
  }
  func.func @transform_3(%arg0: i32) -> (i32, i32) {
    %c0_i32 = arith.constant 0 : i32
    %c0_i32_0 = arith.constant 0 : i32
    %c0_i32_1 = arith.constant 0 : i32
    return %c0_i32, %c0_i32_0 : i32, i32
  }
  func.func @transform_4(%arg0: i32) -> (i32, i32) {
    %c0_i32 = arith.constant 0 : i32
    %c0_i32_0 = arith.constant 0 : i32
    %c0_i32_1 = arith.constant 0 : i32
    return %c0_i32, %c0_i32_0 : i32, i32
  }
  func.func @transform_5(%arg0: i32) -> (i32, i32) {
    %c0_i32 = arith.constant 0 : i32
    %c0_i32_0 = arith.constant 0 : i32
    %c0_i32_1 = arith.constant 0 : i32
    return %c0_i32, %c0_i32_0 : i32, i32
  }
  func.func @transform_6(%arg0: i32) -> (i32, i32) {
    %c0_i32 = arith.constant 0 : i32
    %c0_i32_0 = arith.constant 0 : i32
    %c0_i32_1 = arith.constant 0 : i32
    return %c0_i32, %c0_i32_0 : i32, i32
  }
  func.func @transform_7(%arg0: i32) -> (i32, i32) {
    %c0_i32 = arith.constant 0 : i32
    %c0_i32_0 = arith.constant 0 : i32
    %c0_i32_1 = arith.constant 0 : i32
    return %c0_i32, %c0_i32_0 : i32, i32
  }
  func.func @transform_8(%arg0: i32) -> (i32, i32) {
    %c0_i32 = arith.constant 0 : i32
    %c0_i32_0 = arith.constant 0 : i32
    %c0_i32_1 = arith.constant 0 : i32
    return %c0_i32, %c0_i32_0 : i32, i32
  }
  func.func @transform_9(%arg0: i32) -> (i32, i32) {
    %c0_i32 = arith.constant 0 : i32
    %c0_i32_0 = arith.constant 0 : i32
    return %c0_i32, %arg0 : i32, i32
  }
}

</mosaic_0001>

<bundles_post_ra>
// kernel: tpu_custom_call.1
= control target key start
LH: loop header
LB: loop body
LE: loop exit
PB: predicated region body
PF: predicated region fallthrough
CT: control target
= control target key end

     0   :  { %v688_v3 = vmov 0   ;;  %s970_s0 = inlined_call_operand.vmem [shape: f32[1,128], index: 0, kind: input, shape index: {}]   ;;  %s971_s1 = inlined_call_operand.vmem [shape: f32[64,1], index: 1, kind: input, shape index: {}]   ;;  %s972_s2 = inlined_call_operand.vmem [shape: f32[64,1], index: 2, kind: input, shape index: {}]   ;;  %s973_s3 = inlined_call_operand.vmem [shape: f32[128,64], index: 3, kind: input, shape index: {}]   ;;  %s974_s4 = inlined_call_operand.vmem [shape: f32[128,1], index: 4, kind: input, shape index: {}]   ;;  %s975_s5 = inlined_call_operand.vmem [shape: f32[64,128], index: 5, kind: input, shape index: {}]   ;;  %s976_s6 = inlined_call_operand.vmem [shape: f32[64,1], index: 6, kind: input, shape index: {}]   ;;  %s977_s7 = inlined_call_operand.vmem [shape: f32[2,64], index: 7, kind: input, shape index: {}]   ;;  %s978_s8 = inlined_call_operand.vmem [shape: f32[2,1], index: 8, kind: input, shape index: {}]   ;;  %s979_s9 = inlined_call_operand.hbm [shape: f32[2,128], index: 9, kind: output, shape index: {}]  }
   0x1   :  { %v99_v0 = vld [vmem:[%s972_s2 + $0x30] sm:$0xff]  ;;  %v100_v1 = vld [vmem:[%s972_s2 + $0x38] sm:$0xff]  ;;  %596 = vset.pattern.permute.xlu2 %v688_v3  ;;  %595 = vset.pattern.permute.xlu1 %v688_v3 }
   0x2   :  { %v41_v2 = vld [vmem:[%s971_s1 + $0x38] sm:$0xff]  ;;  %594 = vset.pattern.permute.xlu0 %v688_v3  ;;  %133 = vperm.xlu2 %596, %v99_v0  }
   0x3   :  { %138 = vperm.xlu1 %595, %v100_v1   ;;  %79 = vperm.xlu0 %594, %v41_v2  }
   0x4   :  { %14 = vsyncpa [#allocation3], 0  ;;  %v38_v4 = vld [vmem:[%s971_s1 + $0x20] sm:$0xff]  ;;  %v40_v5 = vld [vmem:[%s971_s1 + $0x30] sm:$0xff]  ;;  %vm269_vm0 = vcmask 523264   ;;  %s689_s19 = smov [#allocation2]  }
   0x5   :  { %v39_v6 = vld [vmem:[%s971_s1 + $0x28] sm:$0xff]  ;;  %v97_v7 = vld [vmem:[%s972_s2 + $0x20] sm:$0xff]  ;;  %v37_v9 = vld [vmem:[%s971_s1 + $0x18] sm:$0xff]  ;;  %s540_s20 = sshll.u32 %s689_s19, 4  ;;  %s542_s23 = sshll.u32 %s979_s9, 4  ;;  %s541_s20 = int_to_ptr.vmem [resolvable:$true] %s540_s20  ;;  %s543_s23 = int_to_ptr.hbm [resolvable:$true] %s542_s23 }
   0x6   :  { %v98_v8 = vld [vmem:[%s972_s2 + $0x28] sm:$0xff]  ;;  %v96_v11 = vld [vmem:[%s972_s2 + $0x18] sm:$0xff]  ;;  %v36_v12 = vld [vmem:[%s971_s1 + $0x10] sm:$0xff] }
   0x7   :  { %v35_v10 = vld [vmem:[%s971_s1 + $0x8] sm:$0xff]  ;;  %v95_v14 = vld [vmem:[%s972_s2 + $0x10] sm:$0xff]  ;;  %v34_v15 = vld [vmem:[%s971_s1] sm:$0xff] }
   0x8   :  { %v94_v13 = vld [vmem:[%s972_s2 + $0x8] sm:$0xff]  ;;  %v187_v16 = vld [vmem:[%s974_s4 + $0x70] sm:$0xff]  ;;  %v93_v17 = vld [vmem:[%s972_s2] sm:$0xff] }
   0x9   :  { %v188_v18 = vld [vmem:[%s974_s4 + $0x78] sm:$0xff]  ;;  %v186_v20 = vld [vmem:[%s974_s4 + $0x68] sm:$0xff]  ;;  %v185_v21 = vld [vmem:[%s974_s4 + $0x60] sm:$0xff] }
   0xa   :  { %64 = vperm.xlu2 %596, %v38_v4   ;;  %v184_v19 = vld [vmem:[%s974_s4 + $0x58] sm:$0xff]  ;;  %v181_v22 = vld [vmem:[%s974_s4 + $0x40] sm:$0xff]  ;;  %v183_v23 = vld [vmem:[%s974_s4 + $0x50] sm:$0xff] }
   0xb   :  { %74 = vperm.xlu0 %594, %v40_v5   ;;  %69 = vperm.xlu1 %595, %v39_v6   ;;  %v182_v24 = vld [vmem:[%s974_s4 + $0x48] sm:$0xff]  ;;  %v180_v26 = vld [vmem:[%s974_s4 + $0x38] sm:$0xff]  ;;  %v179_v27 = vld [vmem:[%s974_s4 + $0x30] sm:$0xff] }
   0xc   :  { %v178_v25 = vld [vmem:[%s974_s4 + $0x28] sm:$0xff]  ;;  %v175_v28 = vld [vmem:[%s974_s4 + $0x10] sm:$0xff]  ;;  %v177_v29 = vld [vmem:[%s974_s4 + $0x20] sm:$0xff] }
   0xd   :  { %v176_v30 = vld [vmem:[%s974_s4 + $0x18] sm:$0xff]  ;;  %v174_v32 = vld [vmem:[%s974_s4 + $0x8] sm:$0xff]  ;;  %v173_v33 = vld [vmem:[%s974_s4] sm:$0xff] }
   0xe   :  { %v414_v31 = vld [vmem:[%s976_s6 + $0x38] sm:$0xff]  ;;  %v411_v34 = vld [vmem:[%s976_s6 + $0x20] sm:$0xff]  ;;  %v413_v35 = vld [vmem:[%s976_s6 + $0x30] sm:$0xff] }
   0xf   :  { %v412_v36 = vld [vmem:[%s976_s6 + $0x28] sm:$0xff]  ;;  %v410_v38 = vld [vmem:[%s976_s6 + $0x18] sm:$0xff]  ;;  %v409_v39 = vld [vmem:[%s976_s6 + $0x10] sm:$0xff] }
  0x10   :  { %v408_v37 = vld [vmem:[%s976_s6 + $0x8] sm:$0xff]  ;;  %v407_v40 = vld [vmem:[%s976_s6] sm:$0xff] }
  0x11   :  { %v505_v41 = vld [vmem:[%s978_s8] sm:$0x3] }
  0x12   :  { %123 = vperm.xlu2 %596, %v97_v7   ;;  %v597_v43 = vld [vmem:[%s970_s0] ss:$0 sm:$0xff] }
  0x13   :  { %128 = vperm.xlu0 %594, %v98_v8   ;;  %59 = vperm.xlu1 %595, %v37_v9  }
  0x1a   :  { %49 = vperm.xlu2 %596, %v35_v10  }
  0x1b   :  { %118 = vperm.xlu1 %595, %v96_v11   ;;  %54 = vperm.xlu0 %594, %v36_v12  }
  0x22   :  { %108 = vperm.xlu2 %596, %v94_v13  }
  0x23   :  { %113 = vperm.xlu0 %594, %v95_v14   ;;  %44 = vperm.xlu1 %595, %v34_v15  }
  0x2a   :  { %261 = vperm.xlu2 %596, %v187_v16  }
  0x2b   :  { %103 = vperm.xlu0 %594, %v93_v17   ;;  %266 = vperm.xlu1 %595, %v188_v18   ;;  %v157_v18 = vld [vmem:[%s973_s3] sm:$0xff] }
  0x32   :  { %246 = vperm.xlu2 %596, %v184_v19   ;;  %v164_v19 = vld [vmem:[%s973_s3 + $0x38] sm:$0xff] }
  0x33   :  { %256 = vperm.xlu0 %594, %v186_v20   ;;  %251 = vperm.xlu1 %595, %v185_v21   ;;  %v158_v21 = vld [vmem:[%s973_s3 + $0x8] sm:$0xff] }
  0x3a   :  { %231 = vperm.xlu2 %596, %v181_v22   ;;  %v165_v22 = vld [vmem:[%s973_s3 + $0x40] sm:$0xff] }
  0x3b   :  { %241 = vperm.xlu0 %594, %v183_v23   ;;  %236 = vperm.xlu1 %595, %v182_v24   ;;  %v159_v23 = vld [vmem:[%s973_s3 + $0x10] sm:$0xff]  ;;  %v166_v24 = vld [vmem:[%s973_s3 + $0x48] sm:$0xff] }
  0x42   :  { %216 = vperm.xlu2 %596, %v178_v25   ;;  %v160_v25 = vld [vmem:[%s973_s3 + $0x18] sm:$0xff] }
  0x43   :  { %226 = vperm.xlu0 %594, %v180_v26   ;;  %221 = vperm.xlu1 %595, %v179_v27   ;;  %v167_v26 = vld [vmem:[%s973_s3 + $0x50] sm:$0xff]  ;;  %v161_v27 = vld [vmem:[%s973_s3 + $0x20] sm:$0xff] }
  0x4a   :  { %201 = vperm.xlu2 %596, %v175_v28   ;;  %v168_v28 = vld [vmem:[%s973_s3 + $0x58] sm:$0xff] }
  0x4b   :  { %211 = vperm.xlu0 %594, %v177_v29   ;;  %206 = vperm.xlu1 %595, %v176_v30   ;;  %v162_v29 = vld [vmem:[%s973_s3 + $0x28] sm:$0xff]  ;;  %v169_v30 = vld [vmem:[%s973_s3 + $0x60] sm:$0xff] }
  0x52   :  { %452 = vperm.xlu2 %596, %v414_v31   ;;  %v163_v31 = vld [vmem:[%s973_s3 + $0x30] sm:$0xff] }
  0x53   :  { %196 = vperm.xlu0 %594, %v174_v32   ;;  %191 = vperm.xlu1 %595, %v173_v33   ;;  %v170_v32 = vld [vmem:[%s973_s3 + $0x68] sm:$0xff]  ;;  %v171_v33 = vld [vmem:[%s973_s3 + $0x70] sm:$0xff] }
  0x5a   :  { %437 = vperm.xlu2 %596, %v411_v34   ;;  %v172_v34 = vld [vmem:[%s973_s3 + $0x78] sm:$0xff] }
  0x5b   :  { %447 = vperm.xlu0 %594, %v413_v35   ;;  %442 = vperm.xlu1 %595, %v412_v36  }
  0x5c   :  { %v134_v42 = vpop.permute.xlu2 %133 }
  0x62   :  { %422 = vperm.xlu2 %596, %v408_v37  }
  0x63   :  { %432 = vperm.xlu0 %594, %v410_v38   ;;  %427 = vperm.xlu1 %595, %v409_v39  }
  0x64   :  { %v65_v44 = vpop.permute.xlu2 %64 }
  0x65   :  { %v89_v55 = vmul.f32 %v597_v43, %v65_v44 }
  0x6b   :  { %417 = vperm.xlu0 %594, %v407_v40   ;;  %508 = vperm.xlu1 %595, %v505_v41  }
  0x6c   :  { %v124_v52 = vpop.permute.xlu2 %123 }
  0x6d   :  { %v145_v59 = vadd.f32 %v124_v52, %v89_v55 }
  0x74   :  { %v50_v62 = vpop.permute.xlu2 %49 }
  0x75   :  { %v139_v45 = vpop.permute.xlu1 %138  ;;  %v80_v46 = vpop.permute.xlu0 %79  ;;  %v86_v5 = vmul.f32 %v597_v43, %v50_v62 }
  0x76   :  { %v92_v47 = vmul.f32 %v597_v43, %v80_v46 }
  0x78   :  { %v148_v48 = vadd.f32 %v139_v45, %v92_v47 }
  0x7a   :  { %598 = vtanh.f32 %v148_v48 }
  0x7c   :  { %v109_v6 = vpop.permute.xlu2 %108 }
  0x7d   :  { %v75_v49 = vpop.permute.xlu0 %74  ;;  %v70_v50 = vpop.permute.xlu1 %69  ;;  %v142_v10 = vadd.f32 %v109_v6, %v86_v5 }
  0x7e   :  { %v91_v51 = vmul.f32 %v597_v43, %v75_v49  ;;  %v90_v56 = vmul.f32 %v597_v43, %v70_v50 }
  0x80   :  { %v599_v53 = vpop.eup %598  ;;  %v147_v54 = vadd.f32 %v134_v42, %v91_v51 }
  0x81   :  { %326 = vmatpush.msra.mxu0 %v599_v53  ;;  %568 = vmatpush.msra.mxu3 %v599_v53 }
  0x82   :  { %600 = vtanh.f32 %v147_v54 }
  0x84   :  { %v262_v45 = vpop.permute.xlu2 %261 }
  0x85   :  { %v129_v57 = vpop.permute.xlu0 %128  ;;  %v60_v58 = vpop.permute.xlu1 %59 }
  0x86   :  { %v146_v60 = vadd.f32 %v129_v57, %v90_v56  ;;  %v88_v63 = vmul.f32 %v597_v43, %v60_v58 }
  0x88   :  { %v601_v61 = vpop.eup %600  ;;  %602 = vtanh.f32 %v146_v60 }
  0x89   :  { %327 = vmatpush.msra.mxu0 %v601_v61  ;;  %569 = vmatpush.msra.mxu3 %v601_v61  ;;  %604 = vtanh.f32 %v145_v59 }
  0x8c   :  { %v247_v51 = vpop.permute.xlu2 %246 }
  0x8d   :  { %v119_v0 = vpop.permute.xlu1 %118  ;;  %v55_v1 = vpop.permute.xlu0 %54 }
  0x8e   :  { %v603_v2 = vpop.eup %602  ;;  %v144_v3 = vadd.f32 %v119_v0, %v88_v63  ;;  %v87_v7 = vmul.f32 %v597_v43, %v55_v1 }
  0x8f   :  { %328 = vmatpush.msra.mxu0 %v603_v2  ;;  %570 = vmatpush.msra.mxu3 %v603_v2  ;;  %v605_v4 = vpop.eup %604 }
  0x90   :  { %606 = vtanh.f32 %v144_v3 }
  0x91   :  { %329 = vmatpush.msra.mxu0 %v605_v4  ;;  %571 = vmatpush.msra.mxu3 %v605_v4 }
  0x94   :  { %v232_v59 = vpop.permute.xlu2 %231 }
  0x95   :  { %v114_v8 = vpop.permute.xlu0 %113  ;;  %v45_v12 = vpop.permute.xlu1 %44 }
  0x96   :  { %v607_v9 = vpop.eup %606  ;;  %v143_v11 = vadd.f32 %v114_v8, %v87_v7  ;;  %v85_v13 = vmul.f32 %v597_v43, %v45_v12 }
  0x97   :  { %330 = vmatpush.msra.mxu0 %v607_v9  ;;  %572 = vmatpush.msra.mxu3 %v607_v9 }
  0x98   :  { %608 = vtanh.f32 %v143_v11 }
  0x99   :  { %610 = vtanh.f32 %v142_v10 }
  0x9c   :  { %v217_v7 = vpop.permute.xlu2 %216 }
  0x9d   :  { %v104_v14 = vpop.permute.xlu0 %103  ;;  %v267_v44 = vpop.permute.xlu1 %266 }
  0x9e   :  { %v609_v15 = vpop.eup %608  ;;  %v141_v16 = vadd.f32 %v104_v14, %v85_v13 }
  0x9f   :  { %331 = vmatpush.msra.mxu0 %v609_v15  ;;  %573 = vmatpush.msra.mxu3 %v609_v15  ;;  %v611_v17 = vpop.eup %610 }
  0xa0   :  { %612 = vtanh.f32 %v141_v16 }
  0xa1   :  { %332 = vmatpush.msra.mxu0 %v611_v17  ;;  %574 = vmatpush.msra.mxu3 %v611_v17 }
  0xa5   :  { %v257_v48 = vpop.permute.xlu0 %256  ;;  %v252_v49 = vpop.permute.xlu1 %251 }
  0xa6   :  { %v613_v20 = vpop.eup %612 }
  0xa7   :  { %333 = vmatpush.msra.mxu0 %v613_v20  ;;  %575 = vmatpush.msra.mxu3 %v613_v20 }
  0xa8   :  { %551 = vmatmul.msk.f32.vlgmr.msra.gmra.mxu0 %vm269_vm0, %v157_v18  ;;  %558 = vmatmul.msk.f32.vlgmr.msra.gmra.mxu3 %vm269_vm0, %v164_v19 }
  0xad   :  { %v242_v53 = vpop.permute.xlu0 %241  ;;  %v237_v54 = vpop.permute.xlu1 %236 }
  0xb0   :  { %552 = vmatmul.msk.f32.gmra.mxu0 %vm269_vm0, %v158_v21  ;;  %559 = vmatmul.msk.f32.gmra.mxu3 %vm269_vm0, %v165_v22  ;;  %v202_v21 = vpop.permute.xlu2 %201 }
  0xb5   :  { %v227_v62 = vpop.permute.xlu0 %226  ;;  %v222_v0 = vpop.permute.xlu1 %221 }
  0xb8   :  { %553 = vmatmul.msk.f32.gmra.mxu0 %vm269_vm0, %v159_v23  ;;  %560 = vmatmul.msk.f32.gmra.mxu3 %vm269_vm0, %v166_v24 }
  0xbd   :  { %v212_v11 = vpop.permute.xlu0 %211  ;;  %v207_v14 = vpop.permute.xlu1 %206 }
  0xc0   :  { %554 = vmatmul.msk.f32.gmra.mxu0 %vm269_vm0, %v160_v25  ;;  %561 = vmatmul.msk.f32.gmra.mxu3 %vm269_vm0, %v167_v26 }
  0xc5   :  { %v197_v24 = vpop.permute.xlu0 %196 }
  0xc8   :  { %555 = vmatmul.msk.f32.gmra.mxu0 %vm269_vm0, %v161_v27  ;;  %562 = vmatmul.msk.f32.gmra.mxu3 %vm269_vm0, %v168_v28  ;;  %v192_v27 = vpop.permute.xlu1 %191 }
  0xd0   :  { %556 = vmatmul.msk.f32.gmra.mxu0 %vm269_vm0, %v162_v29  ;;  %563 = vmatmul.msk.f32.gmra.mxu3 %vm269_vm0, %v169_v30 }
  0xd8   :  { %557 = vmatmul.msk.f32.gmra.mxu0 %vm269_vm0, %v163_v31  ;;  %564 = vmatmul.msk.f32.gmra.mxu3 %vm269_vm0, %v170_v32 }
  0xe0   :  { %565 = vmatmul.msk.f32.gmra.mxu3 %vm269_vm0, %v171_v33 }
  0xe8   :  { %566 = vmatmul.msk.f32.gmra.mxu3 %vm269_vm0, %v172_v34  ;;  %v399_v34 = vld [vmem:[%s975_s5] sm:$0xff] }
 0x125   :  { %v930_v38 = vpop.f32.mrf.mxu0 }
 0x126   :  { %v336_v29 = vadd.f32 %v930_v38, %v192_v27  ;;  %v406_v38 = vld [vmem:[%s975_s5 + $0x38] sm:$0xff] }
 0x12b   :  { %v356_v35 = vpop.f32.mrf.mxu3 }
 0x12c   :  { %v357_v10 = vadd.f32 %v356_v35, %v227_v62  ;;  %v405_v35 = vld [vmem:[%s975_s5 + $0x30] sm:$0xff] }
 0x12d   :  { %v932_v40 = vpop.f32.mrf.mxu0 }
 0x12e   :  { %v339_v26 = vadd.f32 %v932_v40, %v197_v24  ;;  %v402_v40 = vld [vmem:[%s975_s5 + $0x18] sm:$0xff] }
 0x133   :  { %v359_v36 = vpop.f32.mrf.mxu3 }
 0x134   :  { %v360_v6 = vadd.f32 %v359_v36, %v232_v59 }
 0x135   :  { %v934_v42 = vpop.f32.mrf.mxu0 }
 0x136   :  { %v342_v23 = vadd.f32 %v934_v42, %v202_v21  ;;  %v404_v42 = vld [vmem:[%s975_s5 + $0x28] sm:$0xff] }
 0x13b   :  { %v362_v37 = vpop.f32.mrf.mxu3 }
 0x13c   :  { %v363_v4 = vadd.f32 %v362_v37, %v237_v54  ;;  %v400_v37 = vld [vmem:[%s975_s5 + $0x8] sm:$0xff] }
 0x13d   :  { %v344_v46 = vpop.f32.mrf.mxu0 }
 0x13e   :  { %v345_v20 = vadd.f32 %v344_v46, %v207_v14  ;;  %v453_v46 = vpop.permute.xlu2 %452 }
 0x143   :  { %v365_v39 = vpop.f32.mrf.mxu3 }
 0x144   :  { %v366_v2 = vadd.f32 %v365_v39, %v242_v53  ;;  %v401_v39 = vld [vmem:[%s975_s5 + $0x10] sm:$0xff] }
 0x145   :  { %v347_v52 = vpop.f32.mrf.mxu0 }
 0x146   :  { %v348_v18 = vadd.f32 %v347_v52, %v212_v11 }
 0x14b   :  { %v368_v41 = vpop.f32.mrf.mxu3 }
 0x14c   :  { %v369_v63 = vadd.f32 %v368_v41, %v247_v51  ;;  %v403_v41 = vld [vmem:[%s975_s5 + $0x20] sm:$0xff] }
 0x14d   :  { %v350_v60 = vpop.f32.mrf.mxu0 }
 0x14e   :  { %v351_v16 = vadd.f32 %v350_v60, %v217_v7 }
 0x153   :  { %v371_v43 = vpop.f32.mrf.mxu3 }
 0x154   :  { %v372_v61 = vadd.f32 %v371_v43, %v252_v49 }
 0x155   :  { %v353_v8 = vpop.f32.mrf.mxu0 }
 0x156   :  { %v354_v13 = vadd.f32 %v353_v8, %v222_v0 }
 0x15b   :  { %v374_v47 = vpop.f32.mrf.mxu3 }
 0x15c   :  { %v375_v58 = vadd.f32 %v374_v47, %v257_v48  ;;  %v448_v47 = vpop.permute.xlu0 %447 }
 0x163   :  { %v377_v50 = vpop.f32.mrf.mxu3 }
 0x164   :  { %v378_v56 = vadd.f32 %v377_v50, %v262_v45 }
 0x16b   :  { %v380_v55 = vpop.f32.mrf.mxu3 }
 0x16c   :  { %v381_v57 = vadd.f32 %v380_v55, %v267_v44 }
 0x16e   :  { %614 = vtanh.f32 %v381_v57  ;;  %v438_v57 = vpop.permute.xlu2 %437 }
 0x16f   :  { %616 = vtanh.f32 %v378_v56  ;;  %v443_v56 = vpop.permute.xlu1 %442 }
 0x170   :  { %618 = vtanh.f32 %v375_v58  ;;  %v433_v58 = vpop.permute.xlu0 %432 }
 0x171   :  { %620 = vtanh.f32 %v372_v61 }
 0x172   :  { %622 = vtanh.f32 %v369_v63 }
 0x173   :  { %624 = vtanh.f32 %v366_v2 }
 0x174   :  { %v615_v1 = vpop.eup %614  ;;  %626 = vtanh.f32 %v363_v4 }
 0x175   :  { %455 = vmatpush.msra.mxu1 %v615_v1  ;;  %576 = vmatpush.msra.mxu2 %v615_v1  ;;  %v617_v3 = vpop.eup %616  ;;  %628 = vtanh.f32 %v360_v6 }
 0x176   :  { %v619_v5 = vpop.eup %618  ;;  %630 = vtanh.f32 %v357_v10  ;;  %v423_v1 = vpop.permute.xlu2 %422  ;;  %v504_v10 = vld [vmem:[%s977_s7] sm:$0x3] }
 0x177   :  { %456 = vmatpush.msra.mxu1 %v617_v3  ;;  %577 = vmatpush.msra.mxu2 %v617_v3  ;;  %v621_v9 = vpop.eup %620  ;;  %632 = vtanh.f32 %v354_v13  ;;  %v428_v63 = vpop.permute.xlu1 %427 }
 0x178   :  { %v623_v12 = vpop.eup %622  ;;  %634 = vtanh.f32 %v351_v16  ;;  %v418_v3 = vpop.permute.xlu0 %417 }
 0x179   :  { %457 = vmatpush.msra.mxu1 %v619_v5  ;;  %578 = vmatpush.msra.mxu2 %v619_v5  ;;  %v625_v15 = vpop.eup %624  ;;  %636 = vtanh.f32 %v348_v18 }
 0x17a   :  { %v627_v17 = vpop.eup %626  ;;  %638 = vtanh.f32 %v345_v20 }
 0x17b   :  { %458 = vmatpush.msra.mxu1 %v621_v9  ;;  %579 = vmatpush.msra.mxu2 %v621_v9  ;;  %v629_v19 = vpop.eup %628  ;;  %640 = vtanh.f32 %v342_v23 }
 0x17c   :  { %v631_v22 = vpop.eup %630  ;;  %642 = vtanh.f32 %v339_v26 }
 0x17d   :  { %459 = vmatpush.msra.mxu1 %v623_v12  ;;  %580 = vmatpush.msra.mxu2 %v623_v12  ;;  %v633_v25 = vpop.eup %632  ;;  %644 = vtanh.f32 %v336_v29 }
 0x17e   :  { %v635_v28 = vpop.eup %634 }
 0x17f   :  { %460 = vmatpush.msra.mxu1 %v625_v15  ;;  %581 = vmatpush.msra.mxu2 %v625_v15  ;;  %v637_v30 = vpop.eup %636  ;;  %v509_v12 = vpop.permute.xlu1 %508 }
 0x180   :  { %v639_v31 = vpop.eup %638 }
 0x181   :  { %461 = vmatpush.msra.mxu1 %v627_v17  ;;  %582 = vmatpush.msra.mxu2 %v627_v17  ;;  %v641_v32 = vpop.eup %640 }
 0x182   :  { %v643_v33 = vpop.eup %642 }
 0x183   :  { %462 = vmatpush.msra.mxu1 %v629_v19  ;;  %583 = vmatpush.msra.mxu2 %v629_v19  ;;  %v645_v36 = vpop.eup %644 }
 0x185   :  { %463 = vmatpush.msra.mxu1 %v631_v22  ;;  %584 = vmatpush.msra.mxu2 %v631_v22 }
 0x187   :  { %464 = vmatpush.msra.mxu1 %v633_v25  ;;  %585 = vmatpush.msra.mxu2 %v633_v25 }
 0x189   :  { %465 = vmatpush.msra.mxu1 %v635_v28  ;;  %586 = vmatpush.msra.mxu2 %v635_v28 }
 0x18b   :  { %466 = vmatpush.msra.mxu1 %v637_v30  ;;  %587 = vmatpush.msra.mxu2 %v637_v30 }
 0x18d   :  { %467 = vmatpush.msra.mxu1 %v639_v31  ;;  %588 = vmatpush.msra.mxu2 %v639_v31 }
 0x18f   :  { %468 = vmatpush.msra.mxu1 %v641_v32  ;;  %589 = vmatpush.msra.mxu2 %v641_v32 }
 0x191   :  { %469 = vmatpush.msra.mxu1 %v643_v33  ;;  %590 = vmatpush.msra.mxu2 %v643_v33 }
 0x193   :  { %470 = vmatpush.msra.mxu1 %v645_v36  ;;  %591 = vmatpush.msra.mxu2 %v645_v36 }
 0x194   :  { %471 = vmatmul.f32.vlgmr.msra.gmra.mxu1 %v399_v34  ;;  %489 = vmatmul.f32.vlgmr.msra.gmra.mxu2 %v405_v35 }
 0x19c   :  { %474 = vmatmul.f32.gmra.mxu1 %v400_v37  ;;  %492 = vmatmul.f32.gmra.mxu2 %v406_v38 }
 0x1a4   :  { %477 = vmatmul.f32.gmra.mxu1 %v401_v39 }
 0x1ac   :  { %480 = vmatmul.f32.gmra.mxu1 %v402_v40 }
 0x1b4   :  { %483 = vmatmul.f32.gmra.mxu1 %v403_v41 }
 0x1bc   :  { %486 = vmatmul.f32.gmra.mxu1 %v404_v42 }
 0x211   :  { %v472_v43 = vpop.f32.mrf.mxu1 }
 0x212   :  { %v473_v5 = vadd.f32 %v472_v43, %v418_v3 }
 0x217   :  { %v490_v44 = vpop.f32.mrf.mxu2 }
 0x218   :  { %v491_v49 = vadd.f32 %v490_v44, %v448_v47 }
 0x219   :  { %v475_v45 = vpop.f32.mrf.mxu1 }
 0x21a   :  { %v476_v2 = vadd.f32 %v475_v45, %v423_v1 }
 0x21f   :  { %v493_v48 = vpop.f32.mrf.mxu2 }
 0x220   :  { %v494_v50 = vadd.f32 %v493_v48, %v453_v46 }
 0x221   :  { %v478_v51 = vpop.f32.mrf.mxu1 }
 0x222   :  { %646 = vtanh.f32 %v494_v50  ;;  %v479_v0 = vadd.f32 %v478_v51, %v428_v63 }
 0x223   :  { %648 = vtanh.f32 %v491_v49 }
 0x228   :  { %v647_v52 = vpop.eup %646 }
 0x229   :  { %v481_v53 = vpop.f32.mrf.mxu1  ;;  %522 = vmatpush.msrb.mxu2 %v647_v52  ;;  %v649_v54 = vpop.eup %648 }
 0x22a   :  { %v482_v62 = vadd.f32 %v481_v53, %v433_v58 }
 0x22b   :  { %523 = vmatpush.msrb.mxu2 %v649_v54 }
 0x231   :  { %v484_v55 = vpop.f32.mrf.mxu1 }
 0x232   :  { %v485_v60 = vadd.f32 %v484_v55, %v438_v57 }
 0x239   :  { %v487_v59 = vpop.f32.mrf.mxu1 }
 0x23a   :  { %v488_v61 = vadd.f32 %v487_v59, %v443_v56 }
 0x23c   :  { %650 = vtanh.f32 %v488_v61 }
 0x23d   :  { %652 = vtanh.f32 %v485_v60 }
 0x23e   :  { %654 = vtanh.f32 %v482_v62 }
 0x23f   :  { %656 = vtanh.f32 %v479_v0 }
 0x240   :  { %658 = vtanh.f32 %v476_v2 }
 0x241   :  { %660 = vtanh.f32 %v473_v5 }
 0x242   :  { %v651_v4 = vpop.eup %650 }
 0x243   :  { %524 = vmatpush.msrb.mxu2 %v651_v4  ;;  %v653_v6 = vpop.eup %652 }
 0x244   :  { %v655_v7 = vpop.eup %654 }
 0x245   :  { %525 = vmatpush.msrb.mxu2 %v653_v6  ;;  %v657_v8 = vpop.eup %656 }
 0x246   :  { %v659_v9 = vpop.eup %658 }
 0x247   :  { %526 = vmatpush.msrb.mxu2 %v655_v7  ;;  %v661_v11 = vpop.eup %660 }
 0x249   :  { %527 = vmatpush.msrb.mxu2 %v657_v8 }
 0x24b   :  { %528 = vmatpush.msrb.mxu2 %v659_v9 }
 0x24d   :  { %529 = vmatpush.msrb.mxu2 %v661_v11 }
 0x24e   :  { %567 = vmatmul.msk.f32.vlgmr.msrb.gmra.mxu2 %vm269_vm0, %v504_v10 }
 0x2d1   :  { %v531_v13 = vpop.f32.mrf.mxu2 }
 0x2d2   :  { %v532_v14 = vadd.f32 %v531_v13, %v509_v12 }
 0x2d4   :  { %534 = vst [vmem:[#allocation2] sm:$0x3] %v532_v14 }
 0x2d5   :  { %545 = dma.vmem_to_hbm [thread:$0]  %s541_s20, 32, %s543_s23, [#allocation3]  }
 0x2d6   :  { %686 = dma.done.wait [#allocation3], 32  }
 0x2d7   :  { %687 = vsyncadd [#allocation3], 4294967264 }
 0x2d8   :  { %550 = vsyncpa [#allocation3], 1 }

</bundles_post_ra>
